<compile_context>
chip_gen: v6e
topology: v6e:2x2x1
jax: 0.10.0
libtpu: 0.0.40
codegen_flags: <defaults>
</compile_context>

<pallas_src>
import math

import jax
import jax.numpy as jnp
from jax.experimental import pallas as pl
from jax.experimental.pallas import tpu as pltpu


def _round_up(x: int, m: int) -> int:
    return -(-x // m) * m


def _cdiv(a: int, b: int) -> int:
    return -(-a // b)


def _make_kernel(eps: float, compute_dtype):
    inv_sqrt2 = 1.0 / math.sqrt(2.0)

    def kernel(x_ref, wd_ref, bd_ref, g_ref, b_ref, wdec_ref, bdec_ref,
               o_ref, h_scr):
        j = pl.program_id(1)

        # Dense -> gelu -> LayerNorm computed once per token tile (at the
        # first vocab tile); result stays resident in VMEM scratch for all
        # vocab tiles of this token tile (vocab axis is the minor,
        # sequential "arbitrary" grid axis).
        @pl.when(j == 0)
        def _():
            x = x_ref[...]
            h = jnp.dot(x, wd_ref[...], preferred_element_type=jnp.float32)
            h = h + bd_ref[...]
            # exact (erf-based) gelu, matching HF's `gelu`
            h = 0.5 * h * (1.0 + jax.lax.erf(h * inv_sqrt2))
            # LayerNorm over hidden dim (f32 statistics)
            mu = jnp.mean(h, axis=-1, keepdims=True)
            var = jnp.mean((h - mu) * (h - mu), axis=-1, keepdims=True)
            h = (h - mu) * jax.lax.rsqrt(var + eps)
            h = h * g_ref[...] + b_ref[...]
            h_scr[...] = h.astype(h_scr.dtype)

        # Decoder matmul for this (token tile, vocab tile) + tied bias.
        y = jnp.dot(h_scr[...], wdec_ref[...],
                    preferred_element_type=jnp.float32)
        y = y + bdec_ref[...]
        o_ref[...] = y.astype(o_ref.dtype)

    return kernel


def prepare_roberta_lm_head_params(w_dense, b_dense, gamma, beta, w_dec, bias,
                                   *, param_dtype=jnp.bfloat16, tv=2048):
    """One-time layout prep, hoisted out of the per-call hot path.

    w_dense: (H, H) PyTorch (out, in); w_dec: (V, H) PyTorch (out, in).
    Weights are transposed to right-multiply layout and cast to `param_dtype`
    (bf16 in production; MXU-native with f32 accumulation).  The decoder
    weight / bias vocab dim is padded to a multiple of the vocab tile so all
    input DMAs are in bounds; the kernel output itself is exactly V wide
    (padded columns are never written back).
    """
    H = int(w_dense.shape[1])
    V = int(w_dec.shape[0])

    # Vocab tile: multiple of 128 lanes, capped by the (128-padded) vocab.
    tv_eff = max(128, (min(int(tv), _round_up(V, 128)) // 128) * 128)
    V_phys = _round_up(V, tv_eff)          # physical width of weight / bias

    wd_t = jnp.asarray(w_dense).T.astype(param_dtype)            # (H, H)
    wdec_t = jnp.asarray(w_dec).T.astype(param_dtype)            # (H, V)
    wdec_t = jnp.pad(wdec_t, ((0, 0), (0, V_phys - V)))          # (H, V_phys)
    bdec = jnp.pad(jnp.asarray(bias, jnp.float32),
                   (0, V_phys - V)).reshape(1, V_phys)

    return dict(
        wd_t=wd_t,
        bd=jnp.asarray(b_dense, jnp.float32).reshape(1, H),
        gamma=jnp.asarray(gamma, jnp.float32).reshape(1, H),
        beta=jnp.asarray(beta, jnp.float32).reshape(1, H),
        wdec_t=wdec_t,
        bdec=bdec,
        H=H, V=V, V_phys=V_phys, tv=tv_eff,
        compute_dtype=param_dtype,
    )


def _tpu_kind_and_vmem():
    """Device generation string + physical VMEM bytes (robust fallbacks)."""
    kind = ""
    try:
        kind = jax.devices()[0].device_kind.lower()
    except Exception:
        pass
    vmem_cap = None
    try:
        info = pltpu.get_tpu_info()
        cap = int(getattr(info, "vmem_capacity_bytes", 0) or 0)
        if cap > 0:
            vmem_cap = cap
    except Exception:
        pass
    if vmem_cap is None:
        vmem_cap = (64 << 20) if "v7" in kind else (128 << 20)
    return kind, vmem_cap


def _default_tm(kind: str) -> int:
    if "v6" in kind:
        return 1024   # v6e ridge ~700 flop/byte: feed the MXU
    if "v7" in kind:
        return 512    # 64 MiB VMEM; >=2 row tiles for the 2 TensorCores
    return 512        # v5e ridge ~240 flop/byte (and unknown chips)


def _tile_vmem_bytes(tm, tv, H, csz, osz, single_buf_consts=True):
    wbuf = 1 if single_buf_consts else 2
    return (2 * tm * H * csz            # features tiles (double-buffered)
            + wbuf * H * H * csz        # dense weight (grid-invariant)
            + wbuf * 3 * H * 4          # dense bias / gamma / beta
            + 2 * H * tv * csz          # decoder weight tiles
            + 2 * tv * 4                # decoder bias tiles
            + 2 * tm * tv * osz         # output tiles
            + tm * H * csz)             # hidden-state scratch (resident)


def roberta_lm_head(features, params, *, eps=1e-12, tm=None):
    """features: (B, S, H); params from prepare_roberta_lm_head_params.
    Returns (B, S, V) logits in features.dtype."""
    B, S, H = features.shape
    assert H == params["H"]
    V, V_phys, tv = params["V"], params["V_phys"], params["tv"]
    compute_dtype = params["compute_dtype"]
    out_dtype = features.dtype

    kind, vmem_cap = _tpu_kind_and_vmem()
    if tm is None:
        tm = _default_tm(kind)

    N = B * S
    csz = jnp.dtype(compute_dtype).itemsize
    osz = jnp.dtype(out_dtype).itemsize

    # Token tile: multiple of 8 sublanes, capped by the token count; keep at
    # least two row tiles when possible so the "parallel" axis can be split
    # across both TensorCores on dual-core chips.
    tm_eff = max(8, (min(int(tm), _round_up(N, 8)) // 8) * 8)
    if N > 8:
        tm_eff = min(tm_eff, max(8, _round_up(_cdiv(N, 2), 8)))
    # Shrink until the tile working set fits the per-generation VMEM budget
    # (physical capacity minus headroom for Mosaic internal scratch).
    budget = vmem_cap - (12 << 20)
    while tm_eff > 8 and _tile_vmem_bytes(tm_eff, tv, H, csz, osz) > budget:
        tm_eff = max(8, ((tm_eff // 2) // 8) * 8)

    grid_m = _cdiv(N, tm_eff)
    grid_v = V_phys // tv                 # == cdiv(V, tv)
    N_pad = grid_m * tm_eff

    # Cast once in the wrapper (halves the features DMA for bf16 params) and
    # pad rows so every *input* read is in bounds.  The output keeps exactly
    # (N, V); the last row / vocab tiles are handled by masked writeback, so
    # no post-kernel de-pad copy is needed.
    x = features.reshape(N, H).astype(compute_dtype)
    if N_pad != N:
        x = jnp.pad(x, ((0, N_pad - N), (0, 0)))

    footprint = _tile_vmem_bytes(tm_eff, tv, H, csz, osz)
    vmem_limit = int(min(vmem_cap - (2 << 20),
                         max(footprint + (16 << 20), 32 << 20)))

    def _call(single_buf_consts: bool):
        # Grid-invariant inputs: a single VMEM buffer is enough (their block
        # index never changes).  Falls back to default double-buffering if
        # pipeline_mode is not supported by this JAX version.
        const_mode = ({"pipeline_mode": pl.Buffered(1)}
                      if single_buf_consts else {})
        return pl.pallas_call(
            _make_kernel(float(eps), compute_dtype),
            out_shape=jax.ShapeDtypeStruct((N, V), out_dtype),
            grid_spec=pltpu.PrefetchScalarGridSpec(
                num_scalar_prefetch=0,
                grid=(grid_m, grid_v),
                in_specs=[
                    pl.BlockSpec((tm_eff, H), lambda i, j: (i, 0)),   # features
                    pl.BlockSpec((H, H), lambda i, j: (0, 0), **const_mode),
                    pl.BlockSpec((1, H), lambda i, j: (0, 0), **const_mode),
                    pl.BlockSpec((1, H), lambda i, j: (0, 0), **const_mode),
                    pl.BlockSpec((1, H), lambda i, j: (0, 0), **const_mode),
                    pl.BlockSpec((H, tv), lambda i, j: (0, j)),       # dec. weight
                    pl.BlockSpec((1, tv), lambda i, j: (0, j)),       # dec. bias
                ],
                out_specs=pl.BlockSpec((tm_eff, tv), lambda i, j: (i, j)),
                scratch_shapes=[pltpu.VMEM((tm_eff, H), compute_dtype)],
            ),
            compiler_params=pltpu.CompilerParams(
                dimension_semantics=("parallel", "arbitrary"),
                vmem_limit_bytes=vmem_limit),
        )(x, params["wd_t"], params["bd"], params["gamma"], params["beta"],
          params["wdec_t"], params["bdec"])

    try:
        out = _call(True)
    except Exception:
        out = _call(False)

    return out.reshape(B, S, V)


def _reference(features, w_dense, b_dense, gamma, beta, w_dec, bias, eps=1e-12):
    h = features @ w_dense.T + b_dense
    h = 0.5 * h * (1.0 + jax.lax.erf(h / jnp.sqrt(2.0)))
    mu = jnp.mean(h, axis=-1, keepdims=True)
    var = jnp.mean((h - mu) ** 2, axis=-1, keepdims=True)
    h = (h - mu) * jax.lax.rsqrt(var + eps)
    h = h * gamma + beta
    return h @ w_dec.T + bias


if __name__ == "__main__":
    # Small config; V deliberately NOT a multiple of 128 and N not a multiple
    # of the token tile, to exercise both masked-writeback paths.
    B, S, H, V = 2, 7, 128, 250
    eps = 1e-12

    key = jax.random.PRNGKey(0)
    k1, k2, k3, k4, k5, k6, k7 = jax.random.split(key, 7)

    features = jax.random.normal(k1, (B, S, H), dtype=jnp.float32)
    w_dense = 0.02 * jax.random.normal(k2, (H, H), dtype=jnp.float32)   # (out, in)
    b_dense = 0.01 * jax.random.normal(k3, (H,), dtype=jnp.float32)
    gamma = 1.0 + 0.05 * jax.random.normal(k4, (H,), dtype=jnp.float32)
    beta = 0.05 * jax.random.normal(k5, (H,), dtype=jnp.float32)
    w_dec = 0.02 * jax.random.normal(k6, (V, H), dtype=jnp.float32)     # (out, in)
    bias = 0.01 * jax.random.normal(k7, (V,), dtype=jnp.float32)        # decoder.bias

    ref = _reference(features, w_dense, b_dense, gamma, beta, w_dec, bias, eps)

    # 1) f32 params: exact-path check against the f32 reference.  tv=256 with
    #    V=250 exercises the masked last vocab tile.
    p_f32 = prepare_roberta_lm_head_params(
        w_dense, b_dense, gamma, beta, w_dec, bias,
        param_dtype=jnp.float32, tv=256)
    out_f32 = jax.block_until_ready(roberta_lm_head(features, p_f32, eps=eps))
    assert out_f32.shape == (B, S, V)
    assert jnp.allclose(out_f32, ref, atol=1e-4, rtol=1e-4), "f32 mismatch"

    # 2) bf16 params (production fast path): bf16 MXU operands, f32 accum.
    p_bf16 = prepare_roberta_lm_head_params(
        w_dense, b_dense, gamma, beta, w_dec, bias,
        param_dtype=jnp.bfloat16, tv=512)
    out_bf16 = jax.block_until_ready(roberta_lm_head(features, p_bf16, eps=eps))
    assert out_bf16.shape == (B, S, V)
    assert jnp.allclose(out_bf16, ref, atol=3e-2, rtol=3e-2), "bf16 mismatch"

    print("KERNEL_OK")
</pallas_src>

<mosaic_0001>
module attributes {stable_mosaic.version = 11 : i64} {
  func.func @kernel(%arg0: i32, %arg1: i32, %arg2: memref<8x128xf32, #tpu.memory_space<vmem>>, %arg3: memref<128x128xf32, #tpu.memory_space<vmem>>, %arg4: memref<1x128xf32, #tpu.memory_space<vmem>>, %arg5: memref<1x128xf32, #tpu.memory_space<vmem>>, %arg6: memref<1x128xf32, #tpu.memory_space<vmem>>, %arg7: memref<128x256xf32, #tpu.memory_space<vmem>>, %arg8: memref<1x256xf32, #tpu.memory_space<vmem>>, %arg9: memref<8x256xf32, #tpu.memory_space<vmem>>, %arg10: memref<8x128xf32, #tpu.memory_space<vmem>>) attributes {dimension_semantics = [#tpu.dimension_semantics<parallel>, #tpu.dimension_semantics<arbitrary>], iteration_bounds = array<i64: 2, 1>, scalar_prefetch = 0 : i64, scratch_operands = 1 : i64, tpu.core_type = #tpu.core_type<tc>, window_params = [{transform_indices = @transform_0, window_bounds = array<i64: 8, 128>}, {pipeline_mode = #tpu.pipeline_mode<synchronous>, transform_indices = @transform_1, window_bounds = array<i64: 128, 128>}, {pipeline_mode = #tpu.pipeline_mode<synchronous>, transform_indices = @transform_2, window_bounds = array<i64: 1, 128>}, {pipeline_mode = #tpu.pipeline_mode<synchronous>, transform_indices = @transform_3, window_bounds = array<i64: 1, 128>}, {pipeline_mode = #tpu.pipeline_mode<synchronous>, transform_indices = @transform_4, window_bounds = array<i64: 1, 128>}, {transform_indices = @transform_5, window_bounds = array<i64: 128, 256>}, {transform_indices = @transform_6, window_bounds = array<i64: 1, 256>}, {transform_indices = @transform_7, window_bounds = array<i64: 8, 256>}]} {
    %c0_i32 = arith.constant 0 : i32
    %0 = arith.cmpi eq, %arg1, %c0_i32 : i32
    %1 = arith.extui %0 : i1 to i32
    %c0_i32_0 = arith.constant 0 : i32
    %2 = arith.cmpi ne, %1, %c0_i32_0 : i32
    scf.if %2 {
      %c0_8 = arith.constant 0 : index
      %c0_9 = arith.constant 0 : index
      %10 = vector.load %arg2[%c0_8, %c0_9] : memref<8x128xf32, #tpu.memory_space<vmem>>, vector<8x128xf32>
      %c0_10 = arith.constant 0 : index
      %c0_11 = arith.constant 0 : index
      %11 = vector.load %arg3[%c0_10, %c0_11] : memref<128x128xf32, #tpu.memory_space<vmem>>, vector<128x128xf32>
      %cst_12 = arith.constant dense<0.000000e+00> : vector<8x128xf32>
      %12 = tpu.matmul %10, %11, %cst_12 {dimension_numbers = #tpu.dot_dimension_numbers<[1], [0], [0], [1], [0, 0, 1, 1], [], []>} : vector<8x128xf32>, vector<128x128xf32>, vector<8x128xf32> -> vector<8x128xf32>
      %c0_13 = arith.constant 0 : index
      %c0_14 = arith.constant 0 : index
      %13 = vector.load %arg4[%c0_13, %c0_14] : memref<1x128xf32, #tpu.memory_space<vmem>>, vector<1x128xf32>
      %14 = vector.broadcast %13 : vector<1x128xf32> to vector<8x128xf32>
      %15 = arith.addf %12, %14 : vector<8x128xf32>
      %cst_15 = arith.constant 5.000000e-01 : f32
      %16 = vector.broadcast %cst_15 : f32 to vector<8x128xf32>
      %17 = arith.mulf %16, %15 : vector<8x128xf32>
      %cst_16 = arith.constant 0.707106769 : f32
      %18 = vector.broadcast %cst_16 : f32 to vector<8x128xf32>
      %19 = arith.mulf %15, %18 : vector<8x128xf32>
      %20 = math.erf %19 : vector<8x128xf32>
      %cst_17 = arith.constant 1.000000e+00 : f32
      %21 = vector.broadcast %cst_17 : f32 to vector<8x128xf32>
      %22 = arith.addf %21, %20 : vector<8x128xf32>
      %23 = arith.mulf %17, %22 : vector<8x128xf32>
      %cst_18 = arith.constant dense<0.000000e+00> : vector<8xf32>
      %24 = vector.multi_reduction <add>, %23, %cst_18 [1] : vector<8x128xf32> to vector<8xf32>
      %25 = vector.shape_cast %24 : vector<8xf32> to vector<8x1xf32>
      %cst_19 = arith.constant 1.280000e+02 : f32
      %26 = vector.broadcast %cst_19 : f32 to vector<8x1xf32>
      %27 = arith.divf %25, %26 : vector<8x1xf32>
      %28 = vector.broadcast %27 : vector<8x1xf32> to vector<8x128xf32>
      %29 = arith.subf %23, %28 : vector<8x128xf32>
      %30 = vector.broadcast %27 : vector<8x1xf32> to vector<8x128xf32>
      %31 = arith.subf %23, %30 : vector<8x128xf32>
      %32 = arith.mulf %29, %31 : vector<8x128xf32>
      %cst_20 = arith.constant dense<0.000000e+00> : vector<8xf32>
      %33 = vector.multi_reduction <add>, %32, %cst_20 [1] : vector<8x128xf32> to vector<8xf32>
      %34 = vector.shape_cast %33 : vector<8xf32> to vector<8x1xf32>
      %cst_21 = arith.constant 1.280000e+02 : f32
      %35 = vector.broadcast %cst_21 : f32 to vector<8x1xf32>
      %36 = arith.divf %34, %35 : vector<8x1xf32>
      %37 = vector.broadcast %27 : vector<8x1xf32> to vector<8x128xf32>
      %38 = arith.subf %23, %37 : vector<8x128xf32>
      %cst_22 = arith.constant 9.99999996E-13 : f32
      %39 = vector.broadcast %cst_22 : f32 to vector<8x1xf32>
      %40 = arith.addf %36, %39 : vector<8x1xf32>
      %41 = math.rsqrt %40 : vector<8x1xf32>
      %42 = vector.broadcast %41 : vector<8x1xf32> to vector<8x128xf32>
      %43 = arith.mulf %38, %42 : vector<8x128xf32>
      %c0_23 = arith.constant 0 : index
      %c0_24 = arith.constant 0 : index
      %44 = vector.load %arg5[%c0_23, %c0_24] : memref<1x128xf32, #tpu.memory_space<vmem>>, vector<1x128xf32>
      %45 = vector.broadcast %44 : vector<1x128xf32> to vector<8x128xf32>
      %46 = arith.mulf %43, %45 : vector<8x128xf32>
      %c0_25 = arith.constant 0 : index
      %c0_26 = arith.constant 0 : index
      %47 = vector.load %arg6[%c0_25, %c0_26] : memref<1x128xf32, #tpu.memory_space<vmem>>, vector<1x128xf32>
      %48 = vector.broadcast %47 : vector<1x128xf32> to vector<8x128xf32>
      %49 = arith.addf %46, %48 : vector<8x128xf32>
      %c0_27 = arith.constant 0 : index
      %c0_28 = arith.constant 0 : index
      %50 = vector.load %arg10[%c0_27, %c0_28] : memref<8x128xf32, #tpu.memory_space<vmem>>, vector<8x128xf32>
      tpu.vector_store %arg10[%c0_27, %c0_28], %49 {strides = array<i32>} : memref<8x128xf32, #tpu.memory_space<vmem>>, vector<8x128xf32>,
    } else {
    }
    %c0 = arith.constant 0 : index
    %c0_1 = arith.constant 0 : index
    %3 = vector.load %arg10[%c0, %c0_1] : memref<8x128xf32, #tpu.memory_space<vmem>>, vector<8x128xf32>
    %c0_2 = arith.constant 0 : index
    %c0_3 = arith.constant 0 : index
    %4 = vector.load %arg7[%c0_2, %c0_3] : memref<128x256xf32, #tpu.memory_space<vmem>>, vector<128x256xf32>
    %cst = arith.constant dense<0.000000e+00> : vector<8x256xf32>
    %5 = tpu.matmul %3, %4, %cst {dimension_numbers = #tpu.dot_dimension_numbers<[1], [0], [0], [1], [0, 0, 1, 1], [], []>} : vector<8x128xf32>, vector<128x256xf32>, vector<8x256xf32> -> vector<8x256xf32>
    %c0_4 = arith.constant 0 : index
    %c0_5 = arith.constant 0 : index
    %6 = vector.load %arg8[%c0_4, %c0_5] : memref<1x256xf32, #tpu.memory_space<vmem>>, vector<1x256xf32>
    %7 = vector.broadcast %6 : vector<1x256xf32> to vector<8x256xf32>
    %8 = arith.addf %5, %7 : vector<8x256xf32>
    %c0_6 = arith.constant 0 : index
    %c0_7 = arith.constant 0 : index
    %9 = vector.load %arg9[%c0_6, %c0_7] : memref<8x256xf32, #tpu.memory_space<vmem>>, vector<8x256xf32>
    tpu.vector_store %arg9[%c0_6, %c0_7], %8 {strides = array<i32>} : memref<8x256xf32, #tpu.memory_space<vmem>>, vector<8x256xf32>,
    return
  }
  func.func @transform_0(%arg0: i32, %arg1: i32) -> (i32, i32) {
    %c0_i32 = arith.constant 0 : i32
    %c0_i32_0 = arith.constant 0 : i32
    return %arg0, %c0_i32 : i32, i32
  }
  func.func @transform_1(%arg0: i32, %arg1: i32) -> (i32, i32) {
    %c0_i32 = arith.constant 0 : i32
    %c0_i32_0 = arith.constant 0 : i32
    %c0_i32_1 = arith.constant 0 : i32
    return %c0_i32, %c0_i32_0 : i32, i32
  }
  func.func @transform_2(%arg0: i32, %arg1: i32) -> (i32, i32) {
    %c0_i32 = arith.constant 0 : i32
    %c0_i32_0 = arith.constant 0 : i32
    %c0_i32_1 = arith.constant 0 : i32
    return %c0_i32, %c0_i32_0 : i32, i32
  }
  func.func @transform_3(%arg0: i32, %arg1: i32) -> (i32, i32) {
    %c0_i32 = arith.constant 0 : i32
    %c0_i32_0 = arith.constant 0 : i32
    %c0_i32_1 = arith.constant 0 : i32
    return %c0_i32, %c0_i32_0 : i32, i32
  }
  func.func @transform_4(%arg0: i32, %arg1: i32) -> (i32, i32) {
    %c0_i32 = arith.constant 0 : i32
    %c0_i32_0 = arith.constant 0 : i32
    %c0_i32_1 = arith.constant 0 : i32
    return %c0_i32, %c0_i32_0 : i32, i32
  }
  func.func @transform_5(%arg0: i32, %arg1: i32) -> (i32, i32) {
    %c0_i32 = arith.constant 0 : i32
    %c0_i32_0 = arith.constant 0 : i32
    return %c0_i32, %arg1 : i32, i32
  }
  func.func @transform_6(%arg0: i32, %arg1: i32) -> (i32, i32) {
    %c0_i32 = arith.constant 0 : i32
    %c0_i32_0 = arith.constant 0 : i32
    return %c0_i32, %arg1 : i32, i32
  }
  func.func @transform_7(%arg0: i32, %arg1: i32) -> (i32, i32) {
    %c0_i32 = arith.constant 0 : i32
    return %arg0, %arg1 : i32, i32
  }
}

module attributes {stable_mosaic.version = 11 : i64} {
  func.func @kernel(%arg0: i32, %arg1: i32, %arg2: memref<8x128xf32, #tpu.memory_space<vmem>>, %arg3: memref<128x128xf32, #tpu.memory_space<vmem>>, %arg4: memref<1x128xf32, #tpu.memory_space<vmem>>, %arg5: memref<1x128xf32, #tpu.memory_space<vmem>>, %arg6: memref<1x128xf32, #tpu.memory_space<vmem>>, %arg7: memref<128x256xf32, #tpu.memory_space<vmem>>, %arg8: memref<1x256xf32, #tpu.memory_space<vmem>>, %arg9: memref<8x256xf32, #tpu.memory_space<vmem>>, %arg10: memref<8x128xf32, #tpu.memory_space<vmem>>) attributes {dimension_semantics = [#tpu.dimension_semantics<parallel>, #tpu.dimension_semantics<arbitrary>], iteration_bounds = array<i64: 2, 1>, scalar_prefetch = 0 : i64, scratch_operands = 1 : i64, tpu.core_type = #tpu.core_type<tc>, window_params = [{transform_indices = @transform_0, window_bounds = array<i64: 8, 128>}, {pipeline_mode = #tpu.pipeline_mode<synchronous>, transform_indices = @transform_1, window_bounds = array<i64: 128, 128>}, {pipeline_mode = #tpu.pipeline_mode<synchronous>, transform_indices = @transform_2, window_bounds = array<i64: 1, 128>}, {pipeline_mode = #tpu.pipeline_mode<synchronous>, transform_indices = @transform_3, window_bounds = array<i64: 1, 128>}, {pipeline_mode = #tpu.pipeline_mode<synchronous>, transform_indices = @transform_4, window_bounds = array<i64: 1, 128>}, {transform_indices = @transform_5, window_bounds = array<i64: 128, 256>}, {transform_indices = @transform_6, window_bounds = array<i64: 1, 256>}, {transform_indices = @transform_7, window_bounds = array<i64: 8, 256>}]} {
    %c0_i32 = arith.constant 0 : i32
    %0 = arith.cmpi eq, %arg1, %c0_i32 : i32
    %1 = arith.extui %0 : i1 to i32
    %c0_i32_0 = arith.constant 0 : i32
    %2 = arith.cmpi ne, %1, %c0_i32_0 : i32
    scf.if %2 {
      %c0_8 = arith.constant 0 : index
      %c0_9 = arith.constant 0 : index
      %10 = vector.load %arg2[%c0_8, %c0_9] : memref<8x128xf32, #tpu.memory_space<vmem>>, vector<8x128xf32>
      %c0_10 = arith.constant 0 : index
      %c0_11 = arith.constant 0 : index
      %11 = vector.load %arg3[%c0_10, %c0_11] : memref<128x128xf32, #tpu.memory_space<vmem>>, vector<128x128xf32>
      %cst_12 = arith.constant dense<0.000000e+00> : vector<8x128xf32>
      %12 = tpu.matmul %10, %11, %cst_12 {dimension_numbers = #tpu.dot_dimension_numbers<[1], [0], [0], [1], [0, 0, 1, 1], [], []>} : vector<8x128xf32>, vector<128x128xf32>, vector<8x128xf32> -> vector<8x128xf32>
      %c0_13 = arith.constant 0 : index
      %c0_14 = arith.constant 0 : index
      %13 = vector.load %arg4[%c0_13, %c0_14] : memref<1x128xf32, #tpu.memory_space<vmem>>, vector<1x128xf32>
      %14 = vector.broadcast %13 : vector<1x128xf32> to vector<8x128xf32>
      %15 = arith.addf %12, %14 : vector<8x128xf32>
      %cst_15 = arith.constant 5.000000e-01 : f32
      %16 = vector.broadcast %cst_15 : f32 to vector<8x128xf32>
      %17 = arith.mulf %16, %15 : vector<8x128xf32>
      %cst_16 = arith.constant 0.707106769 : f32
      %18 = vector.broadcast %cst_16 : f32 to vector<8x128xf32>
      %19 = arith.mulf %15, %18 : vector<8x128xf32>
      %20 = math.erf %19 : vector<8x128xf32>
      %cst_17 = arith.constant 1.000000e+00 : f32
      %21 = vector.broadcast %cst_17 : f32 to vector<8x128xf32>
      %22 = arith.addf %21, %20 : vector<8x128xf32>
      %23 = arith.mulf %17, %22 : vector<8x128xf32>
      %cst_18 = arith.constant dense<0.000000e+00> : vector<8xf32>
      %24 = vector.multi_reduction <add>, %23, %cst_18 [1] : vector<8x128xf32> to vector<8xf32>
      %25 = vector.shape_cast %24 : vector<8xf32> to vector<8x1xf32>
      %cst_19 = arith.constant 1.280000e+02 : f32
      %26 = vector.broadcast %cst_19 : f32 to vector<8x1xf32>
      %27 = arith.divf %25, %26 : vector<8x1xf32>
      %28 = vector.broadcast %27 : vector<8x1xf32> to vector<8x128xf32>
      %29 = arith.subf %23, %28 : vector<8x128xf32>
      %30 = vector.broadcast %27 : vector<8x1xf32> to vector<8x128xf32>
      %31 = arith.subf %23, %30 : vector<8x128xf32>
      %32 = arith.mulf %29, %31 : vector<8x128xf32>
      %cst_20 = arith.constant dense<0.000000e+00> : vector<8xf32>
      %33 = vector.multi_reduction <add>, %32, %cst_20 [1] : vector<8x128xf32> to vector<8xf32>
      %34 = vector.shape_cast %33 : vector<8xf32> to vector<8x1xf32>
      %cst_21 = arith.constant 1.280000e+02 : f32
      %35 = vector.broadcast %cst_21 : f32 to vector<8x1xf32>
      %36 = arith.divf %34, %35 : vector<8x1xf32>
      %37 = vector.broadcast %27 : vector<8x1xf32> to vector<8x128xf32>
      %38 = arith.subf %23, %37 : vector<8x128xf32>
      %cst_22 = arith.constant 9.99999996E-13 : f32
      %39 = vector.broadcast %cst_22 : f32 to vector<8x1xf32>
      %40 = arith.addf %36, %39 : vector<8x1xf32>
      %41 = math.rsqrt %40 : vector<8x1xf32>
      %42 = vector.broadcast %41 : vector<8x1xf32> to vector<8x128xf32>
      %43 = arith.mulf %38, %42 : vector<8x128xf32>
      %c0_23 = arith.constant 0 : index
      %c0_24 = arith.constant 0 : index
      %44 = vector.load %arg5[%c0_23, %c0_24] : memref<1x128xf32, #tpu.memory_space<vmem>>, vector<1x128xf32>
      %45 = vector.broadcast %44 : vector<1x128xf32> to vector<8x128xf32>
      %46 = arith.mulf %43, %45 : vector<8x128xf32>
      %c0_25 = arith.constant 0 : index
      %c0_26 = arith.constant 0 : index
      %47 = vector.load %arg6[%c0_25, %c0_26] : memref<1x128xf32, #tpu.memory_space<vmem>>, vector<1x128xf32>
      %48 = vector.broadcast %47 : vector<1x128xf32> to vector<8x128xf32>
      %49 = arith.addf %46, %48 : vector<8x128xf32>
      %c0_27 = arith.constant 0 : index
      %c0_28 = arith.constant 0 : index
      %50 = vector.load %arg10[%c0_27, %c0_28] : memref<8x128xf32, #tpu.memory_space<vmem>>, vector<8x128xf32>
      tpu.vector_store %arg10[%c0_27, %c0_28], %49 {strides = array<i32>} : memref<8x128xf32, #tpu.memory_space<vmem>>, vector<8x128xf32>,
    } else {
    }
    %c0 = arith.constant 0 : index
    %c0_1 = arith.constant 0 : index
    %3 = vector.load %arg10[%c0, %c0_1] : memref<8x128xf32, #tpu.memory_space<vmem>>, vector<8x128xf32>
    %c0_2 = arith.constant 0 : index
    %c0_3 = arith.constant 0 : index
    %4 = vector.load %arg7[%c0_2, %c0_3] : memref<128x256xf32, #tpu.memory_space<vmem>>, vector<128x256xf32>
    %cst = arith.constant dense<0.000000e+00> : vector<8x256xf32>
    %5 = tpu.matmul %3, %4, %cst {dimension_numbers = #tpu.dot_dimension_numbers<[1], [0], [0], [1], [0, 0, 1, 1], [], []>} : vector<8x128xf32>, vector<128x256xf32>, vector<8x256xf32> -> vector<8x256xf32>
    %c0_4 = arith.constant 0 : index
    %c0_5 = arith.constant 0 : index
    %6 = vector.load %arg8[%c0_4, %c0_5] : memref<1x256xf32, #tpu.memory_space<vmem>>, vector<1x256xf32>
    %7 = vector.broadcast %6 : vector<1x256xf32> to vector<8x256xf32>
    %8 = arith.addf %5, %7 : vector<8x256xf32>
    %c0_6 = arith.constant 0 : index
    %c0_7 = arith.constant 0 : index
    %9 = vector.load %arg9[%c0_6, %c0_7] : memref<8x256xf32, #tpu.memory_space<vmem>>, vector<8x256xf32>
    tpu.vector_store %arg9[%c0_6, %c0_7], %8 {strides = array<i32>} : memref<8x256xf32, #tpu.memory_space<vmem>>, vector<8x256xf32>,
    return
  }
  func.func @transform_0(%arg0: i32, %arg1: i32) -> (i32, i32) {
    %c0_i32 = arith.constant 0 : i32
    %c0_i32_0 = arith.constant 0 : i32
    return %arg0, %c0_i32 : i32, i32
  }
  func.func @transform_1(%arg0: i32, %arg1: i32) -> (i32, i32) {
    %c0_i32 = arith.constant 0 : i32
    %c0_i32_0 = arith.constant 0 : i32
    %c0_i32_1 = arith.constant 0 : i32
    return %c0_i32, %c0_i32_0 : i32, i32
  }
  func.func @transform_2(%arg0: i32, %arg1: i32) -> (i32, i32) {
    %c0_i32 = arith.constant 0 : i32
    %c0_i32_0 = arith.constant 0 : i32
    %c0_i32_1 = arith.constant 0 : i32
    return %c0_i32, %c0_i32_0 : i32, i32
  }
  func.func @transform_3(%arg0: i32, %arg1: i32) -> (i32, i32) {
    %c0_i32 = arith.constant 0 : i32
    %c0_i32_0 = arith.constant 0 : i32
    %c0_i32_1 = arith.constant 0 : i32
    return %c0_i32, %c0_i32_0 : i32, i32
  }
  func.func @transform_4(%arg0: i32, %arg1: i32) -> (i32, i32) {
    %c0_i32 = arith.constant 0 : i32
    %c0_i32_0 = arith.constant 0 : i32
    %c0_i32_1 = arith.constant 0 : i32
    return %c0_i32, %c0_i32_0 : i32, i32
  }
  func.func @transform_5(%arg0: i32, %arg1: i32) -> (i32, i32) {
    %c0_i32 = arith.constant 0 : i32
    %c0_i32_0 = arith.constant 0 : i32
    return %c0_i32, %arg1 : i32, i32
  }
  func.func @transform_6(%arg0: i32, %arg1: i32) -> (i32, i32) {
    %c0_i32 = arith.constant 0 : i32
    %c0_i32_0 = arith.constant 0 : i32
    return %c0_i32, %arg1 : i32, i32
  }
  func.func @transform_7(%arg0: i32, %arg1: i32) -> (i32, i32) {
    %c0_i32 = arith.constant 0 : i32
    return %arg0, %arg1 : i32, i32
  }
}

</mosaic_0001>

<bundles_post_ra>
// kernel: tpu_custom_call.1
= control target key start
LH: loop header
LB: loop body
LE: loop exit
PB: predicated region body
PF: predicated region fallthrough
CT: control target
= control target key end

     0   :  { %s1321_s0 = inlined_call_operand.hbm [shape: f32[16,128], index: 0, kind: input, shape index: {}]   ;;  %s1322_s1 = inlined_call_operand.hbm [shape: f32[128,128], index: 1, kind: input, shape index: {}]   ;;  %s1323_s2 = inlined_call_operand.vmem [shape: f32[1,128], index: 2, kind: input, shape index: {}]   ;;  %s1324_s3 = inlined_call_operand.vmem [shape: f32[1,128], index: 3, kind: input, shape index: {}]   ;;  %s1325_s4 = inlined_call_operand.vmem [shape: f32[1,128], index: 4, kind: input, shape index: {}]   ;;  %s1326_s5 = inlined_call_operand.hbm [shape: f32[128,256], index: 5, kind: input, shape index: {}]   ;;  %s1327_s6 = inlined_call_operand.vmem [shape: f32[1,256], index: 6, kind: input, shape index: {}]   ;;  %s1328_s7 = inlined_call_operand.hbm [shape: f32[14,250], index: 7, kind: output, shape index: {}]  }
   0x1   :  { %1333 = sst [smem:[#allocation14_spill]] %s1322_s1 }
   0x2   :  { %1334 = sst [smem:[#allocation15_spill]] %s1326_s5 }
   0x3   :  { %12 = vsyncpa [#allocation4], 0 }
   0x4   :  { %14 = vsyncpa [#allocation4 + $0x1], 0 }
   0x5   :  { %15 = vsyncpa [#allocation7], 0 }
   0x6   :  { %16 = vsyncpa [#allocation5], 0 }
   0x7   :  { %18 = vsyncpa [#allocation5 + $0x1], 0  ;;  %s1131_s24 = smov 0   ;;  %s1133_s25 = smov 0  }
   0x8   :  { %s1135_s26 = smov 0   ;;  %s1137_s27 = smov 0  }
   0x9   :  { %s1139_s28 = smov 0   ;;  %s1141_s29 = smov 0  }
   0xa LB: > { %s747_s30 = sadd.s32 4294967295, %s1079_s29   ;;  %s748_s8 = sadd.s32 4294967294, %s1079_s29   ;;  %s1079_s29 = sphi %s1141_s29, %s24_s29   ;;  %s1075_s28 = sphi %s1139_s28, %s1355_s28   ;;  %s1071_s27 = sphi %s1137_s27, %s1354_s27   ;;  %s1067_s26 = sphi %s1135_s26, %s1353_s26   ;;  %s1063_s25 = sphi %s1133_s25, %s1352_s25   ;;  %s1059_s24 = sphi %s1131_s24, %s1351_s24  }
   0xb   : > { %p56_p0 = scmp.ne.s32.totalorder %s1063_s25, %s1059_s24  ;;  %p1165_p1 = scmp.eq.s32.totalorder %s747_s30, 0 }
   0xc   : > { %p1169_p2 = scmp.eq.s32.totalorder %s747_s30, 1  ;;  %p224_p3 = scmp.eq.s32.totalorder %s748_s8, 1 }
   0xd   : > { %s1335_s9 = scalar_select %p1165_p1, 1, 0 }
   0xe   : > { %p1175_p4 = por %p1165_p1, %p56_p0  ;;  %p749_p5 = scmp.ge.s32.totalorder %s1079_s29, 1 }
   0xf   : > { %p1180_p6 = por %p224_p3, %p56_p0  ;;  %p231_p7 = scmp.lt.s32.totalorder %s1079_s29, 3 }
  0x10   : > { %s1337_s11 = scalar_select %p1175_p4, 1, 0 }
  0x11   : > { %s1338_s12 = scalar_select %p1180_p6, 1, 0 }
  0x12   : > { %p1185_p8 = pnand %p749_p5, %p231_p7  ;;  %s1081_s14 = smov [#allocation6]  }
  0x13   : > { %s243_s15 = sshll.u32 %s1081_s14, 4  ;;  %s1082_s17 = smov [#allocation8]   ;;  %s244_s15 = int_to_ptr.vmem [resolvable:$true] %s243_s15 }
  0x14   : > { %p834_p9 = pneg %p1185_p8  ;;  %s268_s18 = sshll.u32 %s1082_s17, 4  ;;  %s269_s18 = int_to_ptr.vmem [resolvable:$true] %s268_s18 }
  0x15   : > { %s926_s19 = scalar_lea.vmem %s244_s15, 2048  ;;  %p934_p5 = scmp.lt.s32.totalorder %s244_s15, %s244_s15 }
  0x16   : > { %p1194_p11 = pnand %p834_p9, %p1165_p1  ;;  %p927_p13 = scmp.ne.s32.totalorder %s244_s15, %s926_s19 }
  0x17   : > { %p935_p7 = scmp.lt.s32.totalorder %s926_s19, %s926_s19 }
  0x18   : > { %p917_p12 = pneg %p1194_p11 }
  0x19   : > { %p936_p10 = por %p935_p7, %p934_p5 }
  0x1a   : > { %p929_p0 = pnand %p927_p13, %p917_p12 }
  0x1c   : > { %p930_p3 = pneg %p929_p0 }
  0x1e   : > { %p937_p9 = pnand %p936_p10, %p930_p3 }
  0x20   : > { %940 = shalt.err (!%p937_p9)
}
  0x21   : > { %s1083_s20 = smov 128   ;;  %s1084_s21 = smov 8  }
  0x22   : > { %s1341_s1 = sld [smem:[#allocation14_spill]]  ;;  %s952_s30 = scalar_lea.vmem %s269_s18, 4096 }
  0x23   : > { %p953_p6 = scmp.ne.s32.totalorder %s269_s18, %s952_s30  ;;  %p960_p1 = scmp.lt.s32.totalorder %s269_s18, %s269_s18 }
  0x24   : > { %p961_p4 = scmp.lt.s32.totalorder %s952_s30, %s952_s30 }
  0x25   : > { %p955_p13 = pnand %p953_p6, %p917_p12 }
  0x26   : > { %p962_p5 = por %p961_p4, %p960_p1 }
  0x27   : > { %p956_p0 = pneg %p955_p13 }
  0x28   : > { %837 = dma.hbm_to_vmem [thread:$0]  (!%p1194_p11), %s1341_s1, 2048, %s244_s15, [#allocation7], %s1083_s20, %s1083_s20, %s1084_s21  }
  0x29   : > { %p963_p10 = pnand %p962_p5, %p956_p0 }
  0x2b   : > { %966 = shalt.err (!%p963_p10)
}
  0x2c   : > { %s1085_s8 = smov 256   ;;  %s1086_s14 = smov 16  }
  0x2d   : > { %s1342_s5 = sld [smem:[#allocation15_spill]]  ;;  %s36_s19 = sadd.s32 1, %s1075_s28 }
  0x2e   : > { %s43_s20 = sadd.s32 1, %s1067_s26  ;;  %p38_p1 = scmp.ge.s32.totalorder %s36_s19, 2 }
  0x2f   : > { %p50_p4 = scmp.ne.s32.totalorder %s1067_s26, %s1063_s25  ;;  %p51_p6 = scmp.eq.s32.totalorder %s1079_s29, 0 }
  0x30   : > { %p851_p12 = scmp.lt.s32.totalorder %s1079_s29, 2  ;;  %s1357_s19 = smov (%p38_p1, %s36_s19), 0 }
  0x31   : > { %1343 = sst [smem:[#allocation13_spill]] %s1357_s19  ;;  %p52_p3 = por %p51_p6, %p50_p4 }
  0x32   : > { %p1226_p7 = por %p1169_p2, %p50_p4  ;;  %s40_s16 = ssub.s32 %s1075_s28, %s1357_s19 }
  0x33   : > { %840 = dma.hbm_to_vmem [thread:$0]  (!%p1194_p11), %s1342_s5, 4096, %s269_s18, [#allocation7], %s1085_s8, %s1085_s8, %s1086_s14  }
  0x34   : > { %s290_s22 = sand.u32 1, %s1067_s26   ;;  %p41_p9 = scmp.eq.s32.totalorder %s40_s16, 0 }
  0x35   : > { %s754_s18 = sshll.u32 %s290_s22, 3  ;;  %s755_s23 = sshll.u32 %s1075_s28, 7 }
  0x36   : > { %s1235_s30 = scalar_select %p41_p9, %s1067_s26, %s43_s20  }
  0x37   : > { %s299_s15 = scalar_lea.hbm %s1321_s0, %s755_s23  ;;  %s294_s17 = scalar_lea.vmem [#allocation3], %s754_s18 }
  0x38   : > { %s301_s1 = sshll.u32 %s294_s17, 4  ;;  %p1242_p11 = pnand %p851_p12, %p52_p3  ;;  %s302_s1 = int_to_ptr.vmem [resolvable:$true] %s301_s1 }
  0x39   : > { %s291_s5 = scalar_lea.sflag [#allocation4], %s290_s22  ;;  %s980_s16 = scalar_lea.vmem %s302_s1, 128 }
  0x3a   : > { %p969_p2 = pneg %p1242_p11  ;;  %p981_p13 = scmp.ne.s32.totalorder %s302_s1, %s980_s16 }
  0x3b   : > { %s1087_s20 = smov [#allocation3]  }
  0x3c   : > { %p983_p0 = pnand %p981_p13, %p969_p2  ;;  %s985_s19 = sshll.u32 %s1087_s20, 4  ;;  %s986_s19 = int_to_ptr.vmem [resolvable:$false] %s985_s19 }
  0x3d   : > { %s987_s23 = scalar_lea.vmem %s986_s19, 256  ;;  %p988_p10 = scmp.lt.s32.totalorder %s302_s1, %s986_s19 }
  0x3e   : > { %p984_p5 = pneg %p983_p0  ;;  %p989_p1 = scmp.lt.s32.totalorder %s987_s23, %s980_s16 }
  0x40   : > { %p990_p4 = por %p989_p1, %p988_p10 }
  0x42   : > { %p991_p6 = pnand %p990_p4, %p984_p5 }
  0x44   : > { %994 = shalt.err (!%p991_p6)
}
  0x45   : > { %844 = dma.hbm_to_vmem [thread:$0]  (!%p1242_p11), %s299_s15, 128, %s302_s1, %s291_s5  }
  0x46   : > { %310 = sbr.rel (%p1185_p8) target bundleno = 843 (0x34b), region = 48  ;;  %s1253_s22 = sand.u32 (!%p1185_p8), 1, %s1063_s25  }
  0x47   : > { %s757_s18 = sshll.u32 (!%p1185_p8), %s1253_s22, 3  ;;  %s313_s8 = scalar_lea.sflag (!%p1185_p8), [#allocation4], %s1253_s22 }
  0x48   : > { %s1257_s14 = scalar_lea.vmem (!%p1185_p8), [#allocation3], %s757_s18  ;;  %p1346_p12 = scmp.ne.s32.totalorder (!%p1185_p8), %s1337_s11, 0 }
  0x4b   : > { %1046 = dma.done.wait (%p1346_p12), %s313_s8, 128  }
  0x4c   : > { %1048 = vsyncadd (%p1346_p12), %s313_s8, 4294967168  ;;  %p1347_p3 = scmp.ne.s32.totalorder %s1335_s9, 0 }
  0x4e   : > { %1050 = dma.done.wait (%p1347_p3), [#allocation7], 6144  }
  0x4f   : > { %1052 = vsyncadd (%p1347_p3), [#allocation7], 4294961152  ;;  %v1088_v0 = vmov 0.0   ;;  %vm1089_vm0 = vmmov 0   ;;  %v386_v1 = vld [vmem:[#allocation6 + $0x78] sm:$0xff]  ;;  %v385_v2 = vld [vmem:[#allocation6 + $0x70] sm:$0xff] }
  0x50   : > { %787 = vmatprep.subr.mxu0 %v1088_v0  ;;  %819 = vmatprep.mubr.msk.f32.mxu0 %vm1089_vm0, %v1088_v0  ;;  %v384_v3 = vld [vmem:[#allocation6 + $0x68] sm:$0xff]  ;;  %v383_v4 = vld [vmem:[#allocation6 + $0x60] sm:$0xff]  ;;  %v382_v5 = vld [vmem:[#allocation6 + $0x58] sm:$0xff]  ;;  %s760_s15 = sshll.u32 %s1253_s22, 4  ;;  %s769_s16 = sshll.u32 %s1071_s27, 8 }
  0x51   : > { %607 = vmatprep.mubr.f32.mxu1 %v1088_v0  ;;  %788 = vmatpush3.msra.mxu0 %v386_v1  ;;  %v381_v6 = vld [vmem:[#allocation6 + $0x50] sm:$0xff]  ;;  %v380_v7 = vld [vmem:[#allocation6 + $0x48] sm:$0xff]  ;;  %v379_v8 = vld [vmem:[#allocation6 + $0x40] sm:$0xff]  ;;  %s358_s20 = scalar_lea.vmem [#allocation9], %s760_s15  ;;  %s617_s1 = scalar_lea.sflag [#allocation5], %s1253_s22 }
  0x52   : > { %789 = vmatprep.subr.mxu0 %v1088_v0  ;;  %v378_v9 = vld [vmem:[#allocation6 + $0x38] sm:$0xff]  ;;  %v377_v10 = vld [vmem:[#allocation6 + $0x30] sm:$0xff]  ;;  %v376_v11 = vld [vmem:[#allocation6 + $0x28] sm:$0xff]  ;;  %s633_s23 = sshll.u32 %s358_s20, 4  ;;  %s1090_s9 = smov [#allocation9]   ;;  %s634_s23 = int_to_ptr.vmem [resolvable:$true] %s633_s23 }
  0x53   : > { %790 = vmatpush3.msra.mxu0 %v385_v2  ;;  %v375_v12 = vld [vmem:[#allocation6 + $0x20] sm:$0xff]  ;;  %v374_v13 = vld [vmem:[#allocation6 + $0x18] sm:$0xff]  ;;  %v373_v14 = vld [vmem:[#allocation6 + $0x10] sm:$0xff]  ;;  %s995_s5 = scalar_lea.vmem %s634_s23, 256  ;;  %s999_s27 = sshll.u32 %s1090_s9, 4  ;;  %s1000_s27 = int_to_ptr.vmem [resolvable:$false] %s999_s27 }
  0x54   : > { %791 = vmatprep.subr.mxu0 %v1088_v0  ;;  %v372_v15 = vld [vmem:[#allocation6 + $0x8] sm:$0xff]  ;;  %v371_v16 = vld [vmem:[#allocation6] sm:$0xff]  ;;  %v370_v17 = vld [vmem:[%s1257_s14] sm:$0xff]  ;;  %s631_s14 = scalar_lea.hbm %s1328_s7, %s769_s16  ;;  %p996_p8 = scmp.ne.s32.totalorder %s634_s23, %s995_s5 }
  0x55   : > { %792 = vmatpush3.msra.mxu0 %v384_v3  ;;  %v761_v18 = vld [vmem:[%s1323_s2] ss:$0 sm:$0xff]  ;;  %v530_v27 = vld [vmem:[#allocation8 + $0xf8] sm:$0xff]  ;;  %v528_v29 = vld [vmem:[#allocation8 + $0xe8] sm:$0xff]  ;;  %s1001_s11 = scalar_lea.vmem %s1000_s27, 512  ;;  %p1002_p2 = scmp.lt.s32.totalorder %s634_s23, %s1000_s27 }
  0x56   : > { %793 = vmatprep.subr.mxu0 %v1088_v0  ;;  %v529_v28 = vld [vmem:[#allocation8 + $0xf0] sm:$0xff]  ;;  %543 = vmatprep.subr.mxu1 %v530_v27  ;;  %v527_v30 = vld [vmem:[#allocation8 + $0xe0] sm:$0xff]  ;;  %v526_v31 = vld [vmem:[#allocation8 + $0xd8] sm:$0xff]  ;;  %p997_p9 = pnand %p996_p8, %p1226_p7  ;;  %p1003_p13 = scmp.lt.s32.totalorder %s1001_s11, %s995_s5 }
  0x57   : > { %794 = vmatpush3.msra.mxu0 %v383_v4  ;;  %544 = vmatpush1.msra.mxu1 %v529_v28  ;;  %v525_v32 = vld [vmem:[#allocation8 + $0xd0] sm:$0xff]  ;;  %v524_v33 = vld [vmem:[#allocation8 + $0xc8] sm:$0xff]  ;;  %v523_v34 = vld [vmem:[#allocation8 + $0xc0] sm:$0xff] }
  0x58   : > { %795 = vmatprep.subr.mxu0 %v1088_v0  ;;  %545 = vmatprep.subr.mxu1 %v528_v29  ;;  %v522_v39 = vld [vmem:[#allocation8 + $0xb8] sm:$0xff]  ;;  %v521_v40 = vld [vmem:[#allocation8 + $0xb0] sm:$0xff]  ;;  %v520_v41 = vld [vmem:[#allocation8 + $0xa8] sm:$0xff]  ;;  %p998_p11 = pneg %p997_p9  ;;  %p1004_p0 = por %p1003_p13, %p1002_p2 }
  0x59   : > { %796 = vmatpush3.msra.mxu0 %v382_v5  ;;  %546 = vmatpush1.msra.mxu1 %v527_v30  ;;  %v519_v42 = vld [vmem:[#allocation8 + $0xa0] sm:$0xff]  ;;  %v518_v43 = vld [vmem:[#allocation8 + $0x98] sm:$0xff]  ;;  %v517_v44 = vld [vmem:[#allocation8 + $0x90] sm:$0xff] }
  0x5a   : > { %797 = vmatprep.subr.mxu0 %v1088_v0  ;;  %547 = vmatprep.subr.mxu1 %v526_v31  ;;  %v516_v45 = vld [vmem:[#allocation8 + $0x88] sm:$0xff]  ;;  %v515_v46 = vld [vmem:[#allocation8 + $0x80] sm:$0xff]  ;;  %v514_v47 = vld [vmem:[#allocation8 + $0x78] sm:$0xff]  ;;  %p1005_p5 = pnand %p1004_p0, %p998_p11 }
  0x5b   : > { %798 = vmatpush3.msra.mxu0 %v381_v6  ;;  %548 = vmatpush1.msra.mxu1 %v525_v32  ;;  %v513_v48 = vld [vmem:[#allocation8 + $0x70] sm:$0xff]  ;;  %v512_v49 = vld [vmem:[#allocation8 + $0x68] sm:$0xff]  ;;  %v511_v50 = vld [vmem:[#allocation8 + $0x60] sm:$0xff] }
  0x5c   : > { %799 = vmatprep.subr.mxu0 %v1088_v0  ;;  %549 = vmatprep.subr.mxu1 %v524_v33  ;;  %v510_v51 = vld [vmem:[#allocation8 + $0x58] sm:$0xff]  ;;  %v509_v52 = vld [vmem:[#allocation8 + $0x50] sm:$0xff]  ;;  %v508_v53 = vld [vmem:[#allocation8 + $0x48] sm:$0xff] }
  0x5d   : > { %800 = vmatpush3.msra.mxu0 %v380_v7  ;;  %550 = vmatpush1.msra.mxu1 %v523_v34  ;;  %v507_v54 = vld [vmem:[#allocation8 + $0x40] sm:$0xff]  ;;  %v506_v55 = vld [vmem:[#allocation8 + $0x38] sm:$0xff]  ;;  %v505_v56 = vld [vmem:[#allocation8 + $0x30] sm:$0xff] }
  0x5e   : > { %801 = vmatprep.subr.mxu0 %v1088_v0  ;;  %551 = vmatprep.subr.mxu1 %v522_v39  ;;  %v504_v57 = vld [vmem:[#allocation8 + $0x28] sm:$0xff]  ;;  %v503_v58 = vld [vmem:[#allocation8 + $0x20] sm:$0xff]  ;;  %v502_v59 = vld [vmem:[#allocation8 + $0x18] sm:$0xff] }
  0x5f   : > { %802 = vmatpush3.msra.mxu0 %v379_v8  ;;  %552 = vmatpush1.msra.mxu1 %v521_v40  ;;  %v501_v60 = vld [vmem:[#allocation8 + $0x10] sm:$0xff]  ;;  %v500_v61 = vld [vmem:[#allocation8 + $0x8] sm:$0xff]  ;;  %v499_v62 = vld [vmem:[#allocation8] sm:$0xff]  ;;  %v533_v8 = vlaneseq }
  0x60   : > { %803 = vmatprep.subr.mxu0 %v1088_v0  ;;  %553 = vmatprep.subr.mxu1 %v520_v41  ;;  %v762_v3 = vld [vmem:[%s1324_s3] ss:$0 sm:$0xff] }
  0x61   : > { %804 = vmatpush3.msra.mxu0 %v378_v9  ;;  %554 = vmatpush1.msra.mxu1 %v519_v42  ;;  %v763_v5 = vld [vmem:[%s1325_s4] ss:$0 sm:$0xff]  ;;  %v534_v9 = vshrl.u32 %v533_v8, 7 }
  0x62   : > { %805 = vmatprep.subr.mxu0 %v1088_v0  ;;  %555 = vmatprep.subr.mxu1 %v518_v43 }
  0x63   : > { %806 = vmatpush3.msra.mxu0 %v377_v10  ;;  %556 = vmatpush1.msra.mxu1 %v517_v44  ;;  %v535_v10 = vsub.s32 0, %v534_v9 }
  0x64   : > { %807 = vmatprep.subr.mxu0 %v1088_v0  ;;  %557 = vmatprep.subr.mxu1 %v516_v45 }
  0x65   : > { %808 = vmatpush3.msra.mxu0 %v376_v11  ;;  %558 = vmatpush1.msra.mxu1 %v515_v46  ;;  %v531_v11 = vld [vmem:[%s1327_s6] sm:$0x3] }
  0x66   : > { %809 = vmatprep.subr.mxu0 %v1088_v0  ;;  %559 = vmatprep.subr.mxu1 %v514_v47 }
  0x67   : > { %810 = vmatpush3.msra.mxu0 %v375_v12  ;;  %560 = vmatpush1.msra.mxu1 %v513_v48  ;;  %v539_v12 = vsub.s32 1, %v534_v9 }
  0x68   : > { %811 = vmatprep.subr.mxu0 %v1088_v0  ;;  %561 = vmatprep.subr.mxu1 %v512_v49 }
  0x69   : > { %812 = vmatpush3.msra.mxu0 %v374_v13  ;;  %562 = vmatpush1.msra.mxu1 %v511_v50  ;;  %v536_v13 = vrot.slane %v531_v11, %v535_v10 }
  0x6a   : > { %813 = vmatprep.subr.mxu0 %v1088_v0  ;;  %563 = vmatprep.subr.mxu1 %v510_v51 }
  0x6b   : > { %814 = vmatpush3.msra.mxu0 %v373_v14  ;;  %564 = vmatpush1.msra.mxu1 %v509_v52  ;;  %v540_v14 = vrot.slane %v531_v11, %v539_v12 }
  0x6c   : > { %815 = vmatprep.subr.mxu0 %v1088_v0  ;;  %565 = vmatprep.subr.mxu1 %v508_v53 }
  0x6d   : > { %816 = vmatpush3.msra.mxu0 %v372_v15  ;;  %566 = vmatpush1.msra.mxu1 %v507_v54 }
  0x6e   : > { %817 = vmatprep.subr.mxu0 %v1088_v0  ;;  %567 = vmatprep.subr.mxu1 %v506_v55 }
  0x6f   : > { %818 = vmatpush3.msra.mxu0 %v371_v16  ;;  %568 = vmatpush1.msra.mxu1 %v505_v56 }
  0x70   : > { %820 = vmatmul.mubr.f32.vlgmr.msra.gmra.mxu0 %v370_v17  ;;  %569 = vmatprep.subr.mxu1 %v504_v57 }
  0x71   : > { %570 = vmatpush1.msra.mxu1 %v503_v58 }
  0x72   : > { %571 = vmatprep.subr.mxu1 %v502_v59 }
  0x73   : > { %572 = vmatpush1.msra.mxu1 %v501_v60 }
  0x74   : > { %573 = vmatprep.subr.mxu1 %v500_v61 }
  0x75   : > { %574 = vmatpush1.msra.mxu1 %v499_v62 }
 0x130   : > { %v460_v19 = vpop.f32.mrf.mxu0 }
 0x131   : > { %v461_v20 = vadd.f32 %v761_v18, %v460_v19 }
 0x132   : > { %v821_v21 = vpop.f32.mrf.mxu0 }
 0x133   : > { %v465_v22 = vmul.f32 0.70710677, %v461_v20  ;;  %v464_v24 = vmul.f32 0.5, %v461_v20 }
 0x135   : > { %911 = verf.f32 %v465_v22 }
 0x142   : > { %v912_v23 = vpop.eup %911 }
 0x143   : > { %v467_v25 = vadd.f32 1.0, %v912_v23 }
 0x145   : > { %v468_v26 = vmul.f32 %v467_v25, %v464_v24 }
 0x147   : > { %469 = vadd.xlane.f32.xlu0 %v468_v26 }
 0x1d0   : > { %v470_v35 = vpop.xlane.xlu0 %469 }
 0x1d1   : > { %v472_v36 = vmul.f32 0.0078125, %v470_v35 }
 0x1d3   : > { %v473_v37 = vsub.f32 %v468_v26, %v472_v36 }
 0x1d5   : > { %v474_v38 = vmul.f32 %v473_v37, %v473_v37 }
 0x1d7   : > { %475 = vadd.xlane.f32.xlu0 %v474_v38 }
 0x260   : > { %v476_v63 = vpop.xlane.xlu0 %475 }
 0x261   : > { %v477_v0 = vmul.f32 0.0078125, %v476_v63 }
 0x263   : > { %v478_v1 = vadd.f32 1e-12, %v477_v0 }
 0x265   : > { %913 = vrsqrt.f32 %v478_v1 }
 0x272   : > { %v914_v2 = vpop.eup %913 }
 0x273   : > { %v480_v4 = vmul.f32 %v914_v2, %v473_v37 }
 0x275   : > { %v488_v6 = vmul.f32 %v762_v3, %v480_v4 }
 0x277   : > { %v496_v7 = vadd.f32 %v763_v5, %v488_v6 }
 0x279   : > { %608 = vmatmul.mubr.f32.vlgmr.msra.gmra.mxu1 %v496_v7 }
 0x339   : > { %v609_v15 = vpop.f32.mrf.mxu1 }
 0x33a   : > { %v610_v16 = vadd.f32 %v609_v15, %v536_v13 }
 0x33b   : > { %v611_v17 = vpop.f32.mrf.mxu1 }
 0x33c   : > { %614 = vst [vmem:[%s358_s20] sm:$0xff] %v610_v16  ;;  %v612_v18 = vadd.f32 %v611_v17, %v540_v14 }
 0x33e   : > { %615 = vst [vmem:[%s358_s20 + $0x8] sm:$0xff] %v612_v18 }
 0x33f   : > { %1008 = shalt.err (!%p1005_p5)
}
 0x340   : > { %s1009_s13 = scalar_lea.hbm %s631_s14, 256  ;;  %s1013_s15 = scalar_lea.hbm %s1328_s7, 512 }
 0x341   : > { %p1010_p10 = scmp.ne.s32.totalorder %s631_s14, %s1009_s13  ;;  %p1014_p6 = scmp.lt.s32.totalorder %s631_s14, %s1328_s7 }
 0x342   : > { %p1015_p12 = scmp.lt.s32.totalorder %s1013_s15, %s1009_s13 }
 0x343   : > { %p1011_p1 = pnand %p1010_p10, %p1226_p7 }
 0x344   : > { %p1016_p3 = por %p1015_p12, %p1014_p6 }
 0x345   : > { %p1012_p4 = pneg %p1011_p1 }
 0x347   : > { %p1017_p8 = pnand %p1016_p3, %p1012_p4 }
 0x349   : > { %1020 = shalt.err (!%p1017_p8)
}
 0x34a   : > { %832 = dma.vmem_to_hbm [thread:$0]  (%p1226_p7), %s634_s23, 256, %s631_s14, %s617_s1  }
 0x34b PF: > { %s645_s16 = sand.u32 1, %s1059_s24   ;;  %p1348_p9 = scmp.ne.s32.totalorder %s1338_s12, 0 }
 0x34c   : > { %p1349_p11 = scmp.ge.s32.totalorder %s1079_s29, 2  ;;  %s646_s20 = scalar_lea.sflag [#allocation5], %s645_s16 }
 0x34e   : > { %p846_p2 = pnand %p1349_p11, %p1348_p9 }
 0x350   : > { %p847_p13 = pneg %p846_p2 }
 0x352   : > { %1054 = dma.done.wait (%p847_p13), %s646_s20, 256  }
 0x353   : > { %1056 = vsyncadd (%p847_p13), %s646_s20, 4294967040  ;;  %s24_s29 = sadd.s32 1, %s1079_s29   ;;  %s1350_s21 = sld [smem:[#allocation13_spill]] }
 0x354   : > { %p21_p0 = scmp.ge.s32.totalorder %s24_s29, 4   ;;  %s1351_s24 = smov %s1063_s25 }
 0x355   : > { %s1352_s25 = smov %s1067_s26  ;;  %s1353_s26 = smov %s1235_s30 }
 0x356   : > { %s1354_s27 = smov %s1075_s28  ;;  %23 = sbr.rel (!%p21_p0) target bundleno = 10 (0xa), region = 109 }
 0x359   : > { %s1355_s28 = smov %s1350_s21 }
 0x35b   :  { %651 = vsyncpa [#allocation4], 1 }
 0x35c   :  { %653 = vsyncpa [#allocation4 + $0x1], 1 }
 0x35d   :  { %654 = vsyncpa [#allocation7], 1 }
 0x35e   :  { %655 = vsyncpa [#allocation5], 1 }
 0x35f   :  { %657 = vsyncpa [#allocation5 + $0x1], 1 }

// kernel: tpu_custom_call.1
= control target key start
LH: loop header
LB: loop body
LE: loop exit
PB: predicated region body
PF: predicated region fallthrough
CT: control target
= control target key end

     0   :  { %s1321_s0 = inlined_call_operand.hbm [shape: f32[16,128], index: 0, kind: input, shape index: {}]   ;;  %s1322_s1 = inlined_call_operand.hbm [shape: f32[128,128], index: 1, kind: input, shape index: {}]   ;;  %s1323_s2 = inlined_call_operand.vmem [shape: f32[1,128], index: 2, kind: input, shape index: {}]   ;;  %s1324_s3 = inlined_call_operand.vmem [shape: f32[1,128], index: 3, kind: input, shape index: {}]   ;;  %s1325_s4 = inlined_call_operand.vmem [shape: f32[1,128], index: 4, kind: input, shape index: {}]   ;;  %s1326_s5 = inlined_call_operand.hbm [shape: f32[128,256], index: 5, kind: input, shape index: {}]   ;;  %s1327_s6 = inlined_call_operand.vmem [shape: f32[1,256], index: 6, kind: input, shape index: {}]   ;;  %s1328_s7 = inlined_call_operand.hbm [shape: f32[14,250], index: 7, kind: output, shape index: {}]  }
   0x1   :  { %1333 = sst [smem:[#allocation14_spill]] %s1322_s1 }
   0x2   :  { %1334 = sst [smem:[#allocation15_spill]] %s1326_s5 }
   0x3   :  { %12 = vsyncpa [#allocation4], 0 }
   0x4   :  { %14 = vsyncpa [#allocation4 + $0x1], 0 }
   0x5   :  { %15 = vsyncpa [#allocation7], 0 }
   0x6   :  { %16 = vsyncpa [#allocation5], 0 }
   0x7   :  { %18 = vsyncpa [#allocation5 + $0x1], 0  ;;  %s1131_s24 = smov 0   ;;  %s1133_s25 = smov 0  }
   0x8   :  { %s1135_s26 = smov 0   ;;  %s1137_s27 = smov 0  }
   0x9   :  { %s1139_s28 = smov 0   ;;  %s1141_s29 = smov 0  }
   0xa LB: > { %s747_s30 = sadd.s32 4294967295, %s1079_s29   ;;  %s748_s8 = sadd.s32 4294967294, %s1079_s29   ;;  %s1079_s29 = sphi %s1141_s29, %s24_s29   ;;  %s1075_s28 = sphi %s1139_s28, %s1355_s28   ;;  %s1071_s27 = sphi %s1137_s27, %s1354_s27   ;;  %s1067_s26 = sphi %s1135_s26, %s1353_s26   ;;  %s1063_s25 = sphi %s1133_s25, %s1352_s25   ;;  %s1059_s24 = sphi %s1131_s24, %s1351_s24  }
   0xb   : > { %p56_p0 = scmp.ne.s32.totalorder %s1063_s25, %s1059_s24  ;;  %p1165_p1 = scmp.eq.s32.totalorder %s747_s30, 0 }
   0xc   : > { %p1169_p2 = scmp.eq.s32.totalorder %s747_s30, 1  ;;  %p224_p3 = scmp.eq.s32.totalorder %s748_s8, 1 }
   0xd   : > { %s1335_s9 = scalar_select %p1165_p1, 1, 0 }
   0xe   : > { %p1175_p4 = por %p1165_p1, %p56_p0  ;;  %p749_p5 = scmp.ge.s32.totalorder %s1079_s29, 1 }
   0xf   : > { %p1180_p6 = por %p224_p3, %p56_p0  ;;  %p231_p7 = scmp.lt.s32.totalorder %s1079_s29, 3 }
  0x10   : > { %s1337_s11 = scalar_select %p1175_p4, 1, 0 }
  0x11   : > { %s1338_s12 = scalar_select %p1180_p6, 1, 0 }
  0x12   : > { %p1185_p8 = pnand %p749_p5, %p231_p7  ;;  %s1081_s14 = smov [#allocation6]  }
  0x13   : > { %s243_s15 = sshll.u32 %s1081_s14, 4  ;;  %s1082_s17 = smov [#allocation8]   ;;  %s244_s15 = int_to_ptr.vmem [resolvable:$true] %s243_s15 }
  0x14   : > { %p834_p9 = pneg %p1185_p8  ;;  %s268_s18 = sshll.u32 %s1082_s17, 4  ;;  %s269_s18 = int_to_ptr.vmem [resolvable:$true] %s268_s18 }
  0x15   : > { %s926_s19 = scalar_lea.vmem %s244_s15, 2048  ;;  %p934_p5 = scmp.lt.s32.totalorder %s244_s15, %s244_s15 }
  0x16   : > { %p1194_p11 = pnand %p834_p9, %p1165_p1  ;;  %p927_p13 = scmp.ne.s32.totalorder %s244_s15, %s926_s19 }
  0x17   : > { %p935_p7 = scmp.lt.s32.totalorder %s926_s19, %s926_s19 }
  0x18   : > { %p917_p12 = pneg %p1194_p11 }
  0x19   : > { %p936_p10 = por %p935_p7, %p934_p5 }
  0x1a   : > { %p929_p0 = pnand %p927_p13, %p917_p12 }
  0x1c   : > { %p930_p3 = pneg %p929_p0 }
  0x1e   : > { %p937_p9 = pnand %p936_p10, %p930_p3 }
  0x20   : > { %940 = shalt.err (!%p937_p9)
}
  0x21   : > { %s1083_s20 = smov 128   ;;  %s1084_s21 = smov 8  }
  0x22   : > { %s1341_s1 = sld [smem:[#allocation14_spill]]  ;;  %s952_s30 = scalar_lea.vmem %s269_s18, 4096 }
  0x23   : > { %p953_p6 = scmp.ne.s32.totalorder %s269_s18, %s952_s30  ;;  %p960_p1 = scmp.lt.s32.totalorder %s269_s18, %s269_s18 }
  0x24   : > { %p961_p4 = scmp.lt.s32.totalorder %s952_s30, %s952_s30 }
  0x25   : > { %p955_p13 = pnand %p953_p6, %p917_p12 }
  0x26   : > { %p962_p5 = por %p961_p4, %p960_p1 }
  0x27   : > { %p956_p0 = pneg %p955_p13 }
  0x28   : > { %837 = dma.hbm_to_vmem [thread:$0]  (!%p1194_p11), %s1341_s1, 2048, %s244_s15, [#allocation7], %s1083_s20, %s1083_s20, %s1084_s21  }
  0x29   : > { %p963_p10 = pnand %p962_p5, %p956_p0 }
  0x2b   : > { %966 = shalt.err (!%p963_p10)
}
  0x2c   : > { %s1085_s8 = smov 256   ;;  %s1086_s14 = smov 16  }
  0x2d   : > { %s1342_s5 = sld [smem:[#allocation15_spill]]  ;;  %s36_s19 = sadd.s32 1, %s1075_s28 }
  0x2e   : > { %s43_s20 = sadd.s32 1, %s1067_s26  ;;  %p38_p1 = scmp.ge.s32.totalorder %s36_s19, 2 }
  0x2f   : > { %p50_p4 = scmp.ne.s32.totalorder %s1067_s26, %s1063_s25  ;;  %p51_p6 = scmp.eq.s32.totalorder %s1079_s29, 0 }
  0x30   : > { %p851_p12 = scmp.lt.s32.totalorder %s1079_s29, 2  ;;  %s1357_s19 = smov (%p38_p1, %s36_s19), 0 }
  0x31   : > { %1343 = sst [smem:[#allocation13_spill]] %s1357_s19  ;;  %p52_p3 = por %p51_p6, %p50_p4 }
  0x32   : > { %p1226_p7 = por %p1169_p2, %p50_p4  ;;  %s40_s16 = ssub.s32 %s1075_s28, %s1357_s19 }
  0x33   : > { %840 = dma.hbm_to_vmem [thread:$0]  (!%p1194_p11), %s1342_s5, 4096, %s269_s18, [#allocation7], %s1085_s8, %s1085_s8, %s1086_s14  }
  0x34   : > { %s290_s22 = sand.u32 1, %s1067_s26   ;;  %p41_p9 = scmp.eq.s32.totalorder %s40_s16, 0 }
  0x35   : > { %s754_s18 = sshll.u32 %s290_s22, 3  ;;  %s755_s23 = sshll.u32 %s1075_s28, 7 }
  0x36   : > { %s1235_s30 = scalar_select %p41_p9, %s1067_s26, %s43_s20  }
  0x37   : > { %s299_s15 = scalar_lea.hbm %s1321_s0, %s755_s23  ;;  %s294_s17 = scalar_lea.vmem [#allocation3], %s754_s18 }
  0x38   : > { %s301_s1 = sshll.u32 %s294_s17, 4  ;;  %p1242_p11 = pnand %p851_p12, %p52_p3  ;;  %s302_s1 = int_to_ptr.vmem [resolvable:$true] %s301_s1 }
  0x39   : > { %s291_s5 = scalar_lea.sflag [#allocation4], %s290_s22  ;;  %s980_s16 = scalar_lea.vmem %s302_s1, 128 }
  0x3a   : > { %p969_p2 = pneg %p1242_p11  ;;  %p981_p13 = scmp.ne.s32.totalorder %s302_s1, %s980_s16 }
  0x3b   : > { %s1087_s20 = smov [#allocation3]  }
  0x3c   : > { %p983_p0 = pnand %p981_p13, %p969_p2  ;;  %s985_s19 = sshll.u32 %s1087_s20, 4  ;;  %s986_s19 = int_to_ptr.vmem [resolvable:$false] %s985_s19 }
  0x3d   : > { %s987_s23 = scalar_lea.vmem %s986_s19, 256  ;;  %p988_p10 = scmp.lt.s32.totalorder %s302_s1, %s986_s19 }
  0x3e   : > { %p984_p5 = pneg %p983_p0  ;;  %p989_p1 = scmp.lt.s32.totalorder %s987_s23, %s980_s16 }
  0x40   : > { %p990_p4 = por %p989_p1, %p988_p10 }
  0x42   : > { %p991_p6 = pnand %p990_p4, %p984_p5 }
  0x44   : > { %994 = shalt.err (!%p991_p6)
}
  0x45   : > { %844 = dma.hbm_to_vmem [thread:$0]  (!%p1242_p11), %s299_s15, 128, %s302_s1, %s291_s5  }
  0x46   : > { %310 = sbr.rel (%p1185_p8) target bundleno = 843 (0x34b), region = 48  ;;  %s1253_s22 = sand.u32 (!%p1185_p8), 1, %s1063_s25  }
  0x47   : > { %s757_s18 = sshll.u32 (!%p1185_p8), %s1253_s22, 3  ;;  %s313_s8 = scalar_lea.sflag (!%p1185_p8), [#allocation4], %s1253_s22 }
  0x48   : > { %s1257_s14 = scalar_lea.vmem (!%p1185_p8), [#allocation3], %s757_s18  ;;  %p1346_p12 = scmp.ne.s32.totalorder (!%p1185_p8), %s1337_s11, 0 }
  0x4b   : > { %1046 = dma.done.wait (%p1346_p12), %s313_s8, 128  }
  0x4c   : > { %1048 = vsyncadd (%p1346_p12), %s313_s8, 4294967168  ;;  %p1347_p3 = scmp.ne.s32.totalorder %s1335_s9, 0 }
  0x4e   : > { %1050 = dma.done.wait (%p1347_p3), [#allocation7], 6144  }
  0x4f   : > { %1052 = vsyncadd (%p1347_p3), [#allocation7], 4294961152  ;;  %v1088_v0 = vmov 0.0   ;;  %vm1089_vm0 = vmmov 0   ;;  %v386_v1 = vld [vmem:[#allocation6 + $0x78] sm:$0xff]  ;;  %v385_v2 = vld [vmem:[#allocation6 + $0x70] sm:$0xff] }
  0x50   : > { %787 = vmatprep.subr.mxu0 %v1088_v0  ;;  %819 = vmatprep.mubr.msk.f32.mxu0 %vm1089_vm0, %v1088_v0  ;;  %v384_v3 = vld [vmem:[#allocation6 + $0x68] sm:$0xff]  ;;  %v383_v4 = vld [vmem:[#allocation6 + $0x60] sm:$0xff]  ;;  %v382_v5 = vld [vmem:[#allocation6 + $0x58] sm:$0xff]  ;;  %s760_s15 = sshll.u32 %s1253_s22, 4  ;;  %s769_s16 = sshll.u32 %s1071_s27, 8 }
  0x51   : > { %607 = vmatprep.mubr.f32.mxu1 %v1088_v0  ;;  %788 = vmatpush3.msra.mxu0 %v386_v1  ;;  %v381_v6 = vld [vmem:[#allocation6 + $0x50] sm:$0xff]  ;;  %v380_v7 = vld [vmem:[#allocation6 + $0x48] sm:$0xff]  ;;  %v379_v8 = vld [vmem:[#allocation6 + $0x40] sm:$0xff]  ;;  %s358_s20 = scalar_lea.vmem [#allocation9], %s760_s15  ;;  %s617_s1 = scalar_lea.sflag [#allocation5], %s1253_s22 }
  0x52   : > { %789 = vmatprep.subr.mxu0 %v1088_v0  ;;  %v378_v9 = vld [vmem:[#allocation6 + $0x38] sm:$0xff]  ;;  %v377_v10 = vld [vmem:[#allocation6 + $0x30] sm:$0xff]  ;;  %v376_v11 = vld [vmem:[#allocation6 + $0x28] sm:$0xff]  ;;  %s633_s23 = sshll.u32 %s358_s20, 4  ;;  %s1090_s9 = smov [#allocation9]   ;;  %s634_s23 = int_to_ptr.vmem [resolvable:$true] %s633_s23 }
  0x53   : > { %790 = vmatpush3.msra.mxu0 %v385_v2  ;;  %v375_v12 = vld [vmem:[#allocation6 + $0x20] sm:$0xff]  ;;  %v374_v13 = vld [vmem:[#allocation6 + $0x18] sm:$0xff]  ;;  %v373_v14 = vld [vmem:[#allocation6 + $0x10] sm:$0xff]  ;;  %s995_s5 = scalar_lea.vmem %s634_s23, 256  ;;  %s999_s27 = sshll.u32 %s1090_s9, 4  ;;  %s1000_s27 = int_to_ptr.vmem [resolvable:$false] %s999_s27 }
  0x54   : > { %791 = vmatprep.subr.mxu0 %v1088_v0  ;;  %v372_v15 = vld [vmem:[#allocation6 + $0x8] sm:$0xff]  ;;  %v371_v16 = vld [vmem:[#allocation6] sm:$0xff]  ;;  %v370_v17 = vld [vmem:[%s1257_s14] sm:$0xff]  ;;  %s631_s14 = scalar_lea.hbm %s1328_s7, %s769_s16  ;;  %p996_p8 = scmp.ne.s32.totalorder %s634_s23, %s995_s5 }
  0x55   : > { %792 = vmatpush3.msra.mxu0 %v384_v3  ;;  %v761_v18 = vld [vmem:[%s1323_s2] ss:$0 sm:$0xff]  ;;  %v530_v27 = vld [vmem:[#allocation8 + $0xf8] sm:$0xff]  ;;  %v528_v29 = vld [vmem:[#allocation8 + $0xe8] sm:$0xff]  ;;  %s1001_s11 = scalar_lea.vmem %s1000_s27, 512  ;;  %p1002_p2 = scmp.lt.s32.totalorder %s634_s23, %s1000_s27 }
  0x56   : > { %793 = vmatprep.subr.mxu0 %v1088_v0  ;;  %v529_v28 = vld [vmem:[#allocation8 + $0xf0] sm:$0xff]  ;;  %543 = vmatprep.subr.mxu1 %v530_v27  ;;  %v527_v30 = vld [vmem:[#allocation8 + $0xe0] sm:$0xff]  ;;  %v526_v31 = vld [vmem:[#allocation8 + $0xd8] sm:$0xff]  ;;  %p997_p9 = pnand %p996_p8, %p1226_p7  ;;  %p1003_p13 = scmp.lt.s32.totalorder %s1001_s11, %s995_s5 }
  0x57   : > { %794 = vmatpush3.msra.mxu0 %v383_v4  ;;  %544 = vmatpush1.msra.mxu1 %v529_v28  ;;  %v525_v32 = vld [vmem:[#allocation8 + $0xd0] sm:$0xff]  ;;  %v524_v33 = vld [vmem:[#allocation8 + $0xc8] sm:$0xff]  ;;  %v523_v34 = vld [vmem:[#allocation8 + $0xc0] sm:$0xff] }
  0x58   : > { %795 = vmatprep.subr.mxu0 %v1088_v0  ;;  %545 = vmatprep.subr.mxu1 %v528_v29  ;;  %v522_v39 = vld [vmem:[#allocation8 + $0xb8] sm:$0xff]  ;;  %v521_v40 = vld [vmem:[#allocation8 + $0xb0] sm:$0xff]  ;;  %v520_v41 = vld [vmem:[#allocation8 + $0xa8] sm:$0xff]  ;;  %p998_p11 = pneg %p997_p9  ;;  %p1004_p0 = por %p1003_p13, %p1002_p2 }
  0x59   : > { %796 = vmatpush3.msra.mxu0 %v382_v5  ;;  %546 = vmatpush1.msra.mxu1 %v527_v30  ;;  %v519_v42 = vld [vmem:[#allocation8 + $0xa0] sm:$0xff]  ;;  %v518_v43 = vld [vmem:[#allocation8 + $0x98] sm:$0xff]  ;;  %v517_v44 = vld [vmem:[#allocation8 + $0x90] sm:$0xff] }
  0x5a   : > { %797 = vmatprep.subr.mxu0 %v1088_v0  ;;  %547 = vmatprep.subr.mxu1 %v526_v31  ;;  %v516_v45 = vld [vmem:[#allocation8 + $0x88] sm:$0xff]  ;;  %v515_v46 = vld [vmem:[#allocation8 + $0x80] sm:$0xff]  ;;  %v514_v47 = vld [vmem:[#allocation8 + $0x78] sm:$0xff]  ;;  %p1005_p5 = pnand %p1004_p0, %p998_p11 }
  0x5b   : > { %798 = vmatpush3.msra.mxu0 %v381_v6  ;;  %548 = vmatpush1.msra.mxu1 %v525_v32  ;;  %v513_v48 = vld [vmem:[#allocation8 + $0x70] sm:$0xff]  ;;  %v512_v49 = vld [vmem:[#allocation8 + $0x68] sm:$0xff]  ;;  %v511_v50 = vld [vmem:[#allocation8 + $0x60] sm:$0xff] }
  0x5c   : > { %799 = vmatprep.subr.mxu0 %v1088_v0  ;;  %549 = vmatprep.subr.mxu1 %v524_v33  ;;  %v510_v51 = vld [vmem:[#allocation8 + $0x58] sm:$0xff]  ;;  %v509_v52 = vld [vmem:[#allocation8 + $0x50] sm:$0xff]  ;;  %v508_v53 = vld [vmem:[#allocation8 + $0x48] sm:$0xff] }
  0x5d   : > { %800 = vmatpush3.msra.mxu0 %v380_v7  ;;  %550 = vmatpush1.msra.mxu1 %v523_v34  ;;  %v507_v54 = vld [vmem:[#allocation8 + $0x40] sm:$0xff]  ;;  %v506_v55 = vld [vmem:[#allocation8 + $0x38] sm:$0xff]  ;;  %v505_v56 = vld [vmem:[#allocation8 + $0x30] sm:$0xff] }
  0x5e   : > { %801 = vmatprep.subr.mxu0 %v1088_v0  ;;  %551 = vmatprep.subr.mxu1 %v522_v39  ;;  %v504_v57 = vld [vmem:[#allocation8 + $0x28] sm:$0xff]  ;;  %v503_v58 = vld [vmem:[#allocation8 + $0x20] sm:$0xff]  ;;  %v502_v59 = vld [vmem:[#allocation8 + $0x18] sm:$0xff] }
  0x5f   : > { %802 = vmatpush3.msra.mxu0 %v379_v8  ;;  %552 = vmatpush1.msra.mxu1 %v521_v40  ;;  %v501_v60 = vld [vmem:[#allocation8 + $0x10] sm:$0xff]  ;;  %v500_v61 = vld [vmem:[#allocation8 + $0x8] sm:$0xff]  ;;  %v499_v62 = vld [vmem:[#allocation8] sm:$0xff]  ;;  %v533_v8 = vlaneseq }
  0x60   : > { %803 = vmatprep.subr.mxu0 %v1088_v0  ;;  %553 = vmatprep.subr.mxu1 %v520_v41  ;;  %v762_v3 = vld [vmem:[%s1324_s3] ss:$0 sm:$0xff] }
  0x61   : > { %804 = vmatpush3.msra.mxu0 %v378_v9  ;;  %554 = vmatpush1.msra.mxu1 %v519_v42  ;;  %v763_v5 = vld [vmem:[%s1325_s4] ss:$0 sm:$0xff]  ;;  %v534_v9 = vshrl.u32 %v533_v8, 7 }
  0x62   : > { %805 = vmatprep.subr.mxu0 %v1088_v0  ;;  %555 = vmatprep.subr.mxu1 %v518_v43 }
  0x63   : > { %806 = vmatpush3.msra.mxu0 %v377_v10  ;;  %556 = vmatpush1.msra.mxu1 %v517_v44  ;;  %v535_v10 = vsub.s32 0, %v534_v9 }
  0x64   : > { %807 = vmatprep.subr.mxu0 %v1088_v0  ;;  %557 = vmatprep.subr.mxu1 %v516_v45 }
  0x65   : > { %808 = vmatpush3.msra.mxu0 %v376_v11  ;;  %558 = vmatpush1.msra.mxu1 %v515_v46  ;;  %v531_v11 = vld [vmem:[%s1327_s6] sm:$0x3] }
  0x66   : > { %809 = vmatprep.subr.mxu0 %v1088_v0  ;;  %559 = vmatprep.subr.mxu1 %v514_v47 }
  0x67   : > { %810 = vmatpush3.msra.mxu0 %v375_v12  ;;  %560 = vmatpush1.msra.mxu1 %v513_v48  ;;  %v539_v12 = vsub.s32 1, %v534_v9 }
  0x68   : > { %811 = vmatprep.subr.mxu0 %v1088_v0  ;;  %561 = vmatprep.subr.mxu1 %v512_v49 }
  0x69   : > { %812 = vmatpush3.msra.mxu0 %v374_v13  ;;  %562 = vmatpush1.msra.mxu1 %v511_v50  ;;  %v536_v13 = vrot.slane %v531_v11, %v535_v10 }
  0x6a   : > { %813 = vmatprep.subr.mxu0 %v1088_v0  ;;  %563 = vmatprep.subr.mxu1 %v510_v51 }
  0x6b   : > { %814 = vmatpush3.msra.mxu0 %v373_v14  ;;  %564 = vmatpush1.msra.mxu1 %v509_v52  ;;  %v540_v14 = vrot.slane %v531_v11, %v539_v12 }
  0x6c   : > { %815 = vmatprep.subr.mxu0 %v1088_v0  ;;  %565 = vmatprep.subr.mxu1 %v508_v53 }
  0x6d   : > { %816 = vmatpush3.msra.mxu0 %v372_v15  ;;  %566 = vmatpush1.msra.mxu1 %v507_v54 }
  0x6e   : > { %817 = vmatprep.subr.mxu0 %v1088_v0  ;;  %567 = vmatprep.subr.mxu1 %v506_v55 }
  0x6f   : > { %818 = vmatpush3.msra.mxu0 %v371_v16  ;;  %568 = vmatpush1.msra.mxu1 %v505_v56 }
  0x70   : > { %820 = vmatmul.mubr.f32.vlgmr.msra.gmra.mxu0 %v370_v17  ;;  %569 = vmatprep.subr.mxu1 %v504_v57 }
  0x71   : > { %570 = vmatpush1.msra.mxu1 %v503_v58 }
  0x72   : > { %571 = vmatprep.subr.mxu1 %v502_v59 }
  0x73   : > { %572 = vmatpush1.msra.mxu1 %v501_v60 }
  0x74   : > { %573 = vmatprep.subr.mxu1 %v500_v61 }
  0x75   : > { %574 = vmatpush1.msra.mxu1 %v499_v62 }
 0x130   : > { %v460_v19 = vpop.f32.mrf.mxu0 }
 0x131   : > { %v461_v20 = vadd.f32 %v761_v18, %v460_v19 }
 0x132   : > { %v821_v21 = vpop.f32.mrf.mxu0 }
 0x133   : > { %v465_v22 = vmul.f32 0.70710677, %v461_v20  ;;  %v464_v24 = vmul.f32 0.5, %v461_v20 }
 0x135   : > { %911 = verf.f32 %v465_v22 }
 0x142   : > { %v912_v23 = vpop.eup %911 }
 0x143   : > { %v467_v25 = vadd.f32 1.0, %v912_v23 }
 0x145   : > { %v468_v26 = vmul.f32 %v467_v25, %v464_v24 }
 0x147   : > { %469 = vadd.xlane.f32.xlu0 %v468_v26 }
 0x1d0   : > { %v470_v35 = vpop.xlane.xlu0 %469 }
 0x1d1   : > { %v472_v36 = vmul.f32 0.0078125, %v470_v35 }
 0x1d3   : > { %v473_v37 = vsub.f32 %v468_v26, %v472_v36 }
 0x1d5   : > { %v474_v38 = vmul.f32 %v473_v37, %v473_v37 }
 0x1d7   : > { %475 = vadd.xlane.f32.xlu0 %v474_v38 }
 0x260   : > { %v476_v63 = vpop.xlane.xlu0 %475 }
 0x261   : > { %v477_v0 = vmul.f32 0.0078125, %v476_v63 }
 0x263   : > { %v478_v1 = vadd.f32 1e-12, %v477_v0 }
 0x265   : > { %913 = vrsqrt.f32 %v478_v1 }
 0x272   : > { %v914_v2 = vpop.eup %913 }
 0x273   : > { %v480_v4 = vmul.f32 %v914_v2, %v473_v37 }
 0x275   : > { %v488_v6 = vmul.f32 %v762_v3, %v480_v4 }
 0x277   : > { %v496_v7 = vadd.f32 %v763_v5, %v488_v6 }
 0x279   : > { %608 = vmatmul.mubr.f32.vlgmr.msra.gmra.mxu1 %v496_v7 }
 0x339   : > { %v609_v15 = vpop.f32.mrf.mxu1 }
 0x33a   : > { %v610_v16 = vadd.f32 %v609_v15, %v536_v13 }
 0x33b   : > { %v611_v17 = vpop.f32.mrf.mxu1 }
 0x33c   : > { %614 = vst [vmem:[%s358_s20] sm:$0xff] %v610_v16  ;;  %v612_v18 = vadd.f32 %v611_v17, %v540_v14 }
 0x33e   : > { %615 = vst [vmem:[%s358_s20 + $0x8] sm:$0xff] %v612_v18 }
 0x33f   : > { %1008 = shalt.err (!%p1005_p5)
}
 0x340   : > { %s1009_s13 = scalar_lea.hbm %s631_s14, 256  ;;  %s1013_s15 = scalar_lea.hbm %s1328_s7, 512 }
 0x341   : > { %p1010_p10 = scmp.ne.s32.totalorder %s631_s14, %s1009_s13  ;;  %p1014_p6 = scmp.lt.s32.totalorder %s631_s14, %s1328_s7 }
 0x342   : > { %p1015_p12 = scmp.lt.s32.totalorder %s1013_s15, %s1009_s13 }
 0x343   : > { %p1011_p1 = pnand %p1010_p10, %p1226_p7 }
 0x344   : > { %p1016_p3 = por %p1015_p12, %p1014_p6 }
 0x345   : > { %p1012_p4 = pneg %p1011_p1 }
 0x347   : > { %p1017_p8 = pnand %p1016_p3, %p1012_p4 }
 0x349   : > { %1020 = shalt.err (!%p1017_p8)
}
 0x34a   : > { %832 = dma.vmem_to_hbm [thread:$0]  (%p1226_p7), %s634_s23, 256, %s631_s14, %s617_s1  }
 0x34b PF: > { %s645_s16 = sand.u32 1, %s1059_s24   ;;  %p1348_p9 = scmp.ne.s32.totalorder %s1338_s12, 0 }
 0x34c   : > { %p1349_p11 = scmp.ge.s32.totalorder %s1079_s29, 2  ;;  %s646_s20 = scalar_lea.sflag [#allocation5], %s645_s16 }
 0x34e   : > { %p846_p2 = pnand %p1349_p11, %p1348_p9 }
 0x350   : > { %p847_p13 = pneg %p846_p2 }
 0x352   : > { %1054 = dma.done.wait (%p847_p13), %s646_s20, 256  }
 0x353   : > { %1056 = vsyncadd (%p847_p13), %s646_s20, 4294967040  ;;  %s24_s29 = sadd.s32 1, %s1079_s29   ;;  %s1350_s21 = sld [smem:[#allocation13_spill]] }
 0x354   : > { %p21_p0 = scmp.ge.s32.totalorder %s24_s29, 4   ;;  %s1351_s24 = smov %s1063_s25 }
 0x355   : > { %s1352_s25 = smov %s1067_s26  ;;  %s1353_s26 = smov %s1235_s30 }
 0x356   : > { %s1354_s27 = smov %s1075_s28  ;;  %23 = sbr.rel (!%p21_p0) target bundleno = 10 (0xa), region = 109 }
 0x359   : > { %s1355_s28 = smov %s1350_s21 }
 0x35b   :  { %651 = vsyncpa [#allocation4], 1 }
 0x35c   :  { %653 = vsyncpa [#allocation4 + $0x1], 1 }
 0x35d   :  { %654 = vsyncpa [#allocation7], 1 }
 0x35e   :  { %655 = vsyncpa [#allocation5], 1 }
 0x35f   :  { %657 = vsyncpa [#allocation5 + $0x1], 1 }

</bundles_post_ra>
